<compile_context>
chip_gen: v7x
topology: tpu7x:2x2x1
jax: 0.10.0
libtpu: 0.0.40
codegen_flags: <defaults>
</compile_context>

<pallas_src>
import jax
import jax.numpy as jnp
from jax.experimental import pallas as pl
from jax.experimental.pallas import tpu as pltpu


def _normalize_f32(z):
    # F.normalize(z, dim=-1) with eps=1e-12 (clamped), computed in f32.
    z = z.astype(jnp.float32)
    sumsq = jnp.sum(z * z, axis=-1, keepdims=True)
    return z * jax.lax.rsqrt(jnp.maximum(sumsq, jnp.float32(1e-24)))


def au_loss(z1, z2, alpha=2.0, t=2.0, block_rows=256):
    """Pallas implementation of AULoss.forward(z1, z2). Returns a scalar f32 loss.

    block_rows: batch-tile size. Keep <=128 for very wide D on v7x (64 MiB VMEM),
    512+ on v5e/v6e to amortize per-grid-step overhead.
    """
    assert z1.shape == z2.shape and z1.ndim == 2
    n, d = z1.shape
    assert n >= 2, "uniform_loss needs at least 2 rows"

    alpha = float(alpha)
    neg_t = -float(t)

    # --- tile the batch (sublane) axis; keep the full feature dim on the lane axis.
    tn = max(8, (min(block_rows, n) // 8) * 8)
    n_blocks = pl.cdiv(n, tn)
    n_pad = n_blocks * tn
    if n_pad != n:
        pad = ((0, n_pad - n), (0, 0))
        z1 = jnp.pad(z1, pad)
        z2 = jnp.pad(z2, pad)

    inv_n = 1.0 / n
    inv_pairs = 1.0 / (n * (n - 1))

    def kernel(z1i_ref, z2i_ref, z1j_ref, z2j_ref, out_ref, acc_ref):
        i = pl.program_id(0)
        j = pl.program_id(1)
        last_i = pl.num_programs(0) - 1
        last_j = pl.num_programs(1) - 1

        @pl.when(jnp.logical_and(i == 0, j == 0))
        def _init():
            acc_ref[0] = jnp.float32(0.0)   # sum_i ||x1_i - x2_i||^alpha
            acc_ref[1] = jnp.float32(0.0)   # sum_{i != j} exp(-t * d2(x1_i, x1_j))
            acc_ref[2] = jnp.float32(0.0)   # sum_{i != j} exp(-t * d2(x2_i, x2_j))

        x1i = _normalize_f32(z1i_ref[...])   # (tn, d)
        x2i = _normalize_f32(z2i_ref[...])
        x1j = _normalize_f32(z1j_ref[...])
        x2j = _normalize_f32(z2j_ref[...])

        # global row / column indices of this (i, j) tile -> padding + diagonal masks
        row = jax.lax.broadcasted_iota(jnp.int32, (tn, 1), 0) + i * tn
        col = jax.lax.broadcasted_iota(jnp.int32, (1, tn), 1) + j * tn
        valid_row = (row < n).astype(jnp.float32)            # (tn, 1)
        valid_col = (col < n).astype(jnp.float32)            # (1, tn)

        # ---- alignment term: count each row tile exactly once (on the j == 0 pass) ----
        @pl.when(j == 0)
        def _align():
            diff = x1i - x2i
            d2 = jnp.sum(diff * diff, axis=-1, keepdims=True)     # (tn, 1)
            if alpha == 2.0:
                a = d2
            else:
                a = jnp.power(jnp.maximum(d2, 0.0), alpha * 0.5)
            acc_ref[0] += jnp.sum(a * valid_row)

        # ---- uniformity terms: pairwise sq. distances via the Gram matrix (MXU) ----
        # ||x_i - x_j||^2 = 2 - 2 <x_i, x_j>   for unit-norm rows.
        pair_mask = (valid_row * valid_col) * (row != col).astype(jnp.float32)  # (tn, tn)
        g1 = jnp.dot(x1i, x1j.T, preferred_element_type=jnp.float32)            # (tn, tn)
        g2 = jnp.dot(x2i, x2j.T, preferred_element_type=jnp.float32)
        e1 = jnp.exp(neg_t * jnp.maximum(2.0 - 2.0 * g1, 0.0))
        e2 = jnp.exp(neg_t * jnp.maximum(2.0 - 2.0 * g2, 0.0))
        acc_ref[1] += jnp.sum(e1 * pair_mask)
        acc_ref[2] += jnp.sum(e2 * pair_mask)

        @pl.when(jnp.logical_and(i == last_i, j == last_j))
        def _finalize():
            align = acc_ref[0] * inv_n
            u1 = jnp.log(acc_ref[1] * inv_pairs)
            u2 = jnp.log(acc_ref[2] * inv_pairs)
            out_ref[0] = align + 0.5 * (u1 + u2)

    itemsize = jnp.dtype(z1.dtype).itemsize
    cost = pl.CostEstimate(
        flops=4 * n_pad * n_pad * d + 10 * n_pad * d,
        transcendentals=2 * n_pad * n_pad + 4 * n_pad,
        bytes_accessed=n_blocks * n_blocks * 4 * tn * d * itemsize + 4,
    )

    out = pl.pallas_call(
        kernel,
        out_shape=jax.ShapeDtypeStruct((1,), jnp.float32),
        grid_spec=pltpu.PrefetchScalarGridSpec(
            num_scalar_prefetch=0,
            grid=(n_blocks, n_blocks),
            in_specs=[
                pl.BlockSpec((tn, d), lambda i, j: (i, 0)),   # z1 row-tile i
                pl.BlockSpec((tn, d), lambda i, j: (i, 0)),   # z2 row-tile i
                pl.BlockSpec((tn, d), lambda i, j: (j, 0)),   # z1 row-tile j
                pl.BlockSpec((tn, d), lambda i, j: (j, 0)),   # z2 row-tile j
            ],
            out_specs=pl.BlockSpec(memory_space=pltpu.MemorySpace.SMEM),
            scratch_shapes=[pltpu.SMEM((3,), jnp.float32)],
        ),
        compiler_params=pltpu.CompilerParams(
            dimension_semantics=("arbitrary", "arbitrary")),
        cost_estimate=cost,
    )(z1, z2, z1, z2)
    return out[0]


def _reference(z1, z2, alpha=2.0, t=2.0):
    # pure-JAX reference matching the PyTorch AULoss forward
    def normalize(x):
        nrm = jnp.linalg.norm(x, axis=-1, keepdims=True)
        return x / jnp.maximum(nrm, 1e-12)

    x1 = normalize(z1.astype(jnp.float32))
    x2 = normalize(z2.astype(jnp.float32))
    align = jnp.mean(jnp.linalg.norm(x1 - x2, axis=1) ** alpha)

    def uniform(x):
        d2 = jnp.sum((x[:, None, :] - x[None, :, :]) ** 2, axis=-1)
        nn = x.shape[0]
        iu, ju = jnp.triu_indices(nn, k=1)
        return jnp.log(jnp.mean(jnp.exp(-t * d2[iu, ju])))

    return align + 0.5 * (uniform(x1) + uniform(x2))


if __name__ == "__main__":
    key = jax.random.PRNGKey(0)
    k1, k2 = jax.random.split(key)

    N, D = 16, 32
    z1 = jax.random.normal(k1, (N, D), dtype=jnp.float32)
    z2 = jax.random.normal(k2, (N, D), dtype=jnp.float32)

    # block_rows=8 -> 2x2 grid of (8, 32) tiles: exercises the tiled accumulator path.
    loss = au_loss(z1, z2, alpha=2.0, t=2.0, block_rows=8)
    loss = jax.block_until_ready(loss)
    ref = _reference(z1, z2, alpha=2.0, t=2.0)
    assert jnp.allclose(loss, ref, atol=1e-4, rtol=1e-4), (loss, ref)

    # uneven batch (padded rows masked inside the kernel)
    loss2 = jax.block_until_ready(au_loss(z1[:13], z2[:13], block_rows=8))
    ref2 = _reference(z1[:13], z2[:13])
    assert jnp.allclose(loss2, ref2, atol=1e-4, rtol=1e-4), (loss2, ref2)

    print("KERNEL_OK")
</pallas_src>

<mosaic_0001>
module attributes {stable_mosaic.version = 11 : i64} {
  func.func @kernel(%arg0: i32, %arg1: i32, %arg2: memref<8x32xf32, #tpu.memory_space<vmem>>, %arg3: memref<8x32xf32, #tpu.memory_space<vmem>>, %arg4: memref<8x32xf32, #tpu.memory_space<vmem>>, %arg5: memref<8x32xf32, #tpu.memory_space<vmem>>, %arg6: memref<1xf32, #tpu.memory_space<smem>>, %arg7: memref<3xf32, #tpu.memory_space<smem>>) attributes {dimension_semantics = [#tpu.dimension_semantics<arbitrary>, #tpu.dimension_semantics<arbitrary>], iteration_bounds = array<i64: 2, 2>, scalar_prefetch = 0 : i64, scratch_operands = 1 : i64, tpu.core_type = #tpu.core_type<tc>, window_params = [{transform_indices = @transform_0, window_bounds = array<i64: 8, 32>}, {transform_indices = @transform_1, window_bounds = array<i64: 8, 32>}, {transform_indices = @transform_2, window_bounds = array<i64: 8, 32>}, {transform_indices = @transform_3, window_bounds = array<i64: 8, 32>}, {transform_indices = @transform_4, window_bounds = array<i64: 1>}]} {
    %c0_i32 = arith.constant 0 : i32
    %0 = arith.cmpi eq, %arg0, %c0_i32 : i32
    %c0_i32_0 = arith.constant 0 : i32
    %1 = arith.cmpi eq, %arg1, %c0_i32_0 : i32
    %2 = arith.andi %0, %1 : i1
    %3 = arith.extui %2 : i1 to i32
    %c0_i32_1 = arith.constant 0 : i32
    %4 = arith.cmpi ne, %3, %c0_i32_1 : i32
    scf.if %4 {
      %cst_36 = arith.constant 0.000000e+00 : f32
      %c0_37 = arith.constant 0 : index
      %112 = memref.load %arg7[%c0_37] : memref<3xf32, #tpu.memory_space<smem>>
      memref.store %cst_36, %arg7[%c0_37] : memref<3xf32, #tpu.memory_space<smem>>
      %cst_38 = arith.constant 0.000000e+00 : f32
      %c1_39 = arith.constant 1 : index
      %113 = memref.load %arg7[%c1_39] : memref<3xf32, #tpu.memory_space<smem>>
      memref.store %cst_38, %arg7[%c1_39] : memref<3xf32, #tpu.memory_space<smem>>
      %cst_40 = arith.constant 0.000000e+00 : f32
      %c2_41 = arith.constant 2 : index
      %114 = memref.load %arg7[%c2_41] : memref<3xf32, #tpu.memory_space<smem>>
      memref.store %cst_40, %arg7[%c2_41] : memref<3xf32, #tpu.memory_space<smem>>
    } else {
    }
    %c0 = arith.constant 0 : index
    %c0_2 = arith.constant 0 : index
    %5 = vector.load %arg2[%c0, %c0_2] : memref<8x32xf32, #tpu.memory_space<vmem>>, vector<8x32xf32>
    %6 = arith.mulf %5, %5 : vector<8x32xf32>
    %cst = arith.constant dense<0.000000e+00> : vector<8xf32>
    %7 = vector.multi_reduction <add>, %6, %cst [1] : vector<8x32xf32> to vector<8xf32>
    %8 = vector.shape_cast %7 : vector<8xf32> to vector<8x1xf32>
    %cst_3 = arith.constant 1.000000e-24 : f32
    %9 = vector.broadcast %cst_3 : f32 to vector<8x1xf32>
    %10 = arith.maximumf %8, %9 : vector<8x1xf32>
    %11 = math.rsqrt %10 : vector<8x1xf32>
    %12 = vector.broadcast %11 : vector<8x1xf32> to vector<8x32xf32>
    %13 = arith.mulf %5, %12 : vector<8x32xf32>
    %c0_4 = arith.constant 0 : index
    %c0_5 = arith.constant 0 : index
    %14 = vector.load %arg3[%c0_4, %c0_5] : memref<8x32xf32, #tpu.memory_space<vmem>>, vector<8x32xf32>
    %15 = arith.mulf %14, %14 : vector<8x32xf32>
    %cst_6 = arith.constant dense<0.000000e+00> : vector<8xf32>
    %16 = vector.multi_reduction <add>, %15, %cst_6 [1] : vector<8x32xf32> to vector<8xf32>
    %17 = vector.shape_cast %16 : vector<8xf32> to vector<8x1xf32>
    %cst_7 = arith.constant 1.000000e-24 : f32
    %18 = vector.broadcast %cst_7 : f32 to vector<8x1xf32>
    %19 = arith.maximumf %17, %18 : vector<8x1xf32>
    %20 = math.rsqrt %19 : vector<8x1xf32>
    %21 = vector.broadcast %20 : vector<8x1xf32> to vector<8x32xf32>
    %22 = arith.mulf %14, %21 : vector<8x32xf32>
    %c0_8 = arith.constant 0 : index
    %c0_9 = arith.constant 0 : index
    %23 = vector.load %arg4[%c0_8, %c0_9] : memref<8x32xf32, #tpu.memory_space<vmem>>, vector<8x32xf32>
    %24 = arith.mulf %23, %23 : vector<8x32xf32>
    %cst_10 = arith.constant dense<0.000000e+00> : vector<8xf32>
    %25 = vector.multi_reduction <add>, %24, %cst_10 [1] : vector<8x32xf32> to vector<8xf32>
    %26 = vector.shape_cast %25 : vector<8xf32> to vector<8x1xf32>
    %cst_11 = arith.constant 1.000000e-24 : f32
    %27 = vector.broadcast %cst_11 : f32 to vector<8x1xf32>
    %28 = arith.maximumf %26, %27 : vector<8x1xf32>
    %29 = math.rsqrt %28 : vector<8x1xf32>
    %30 = vector.broadcast %29 : vector<8x1xf32> to vector<8x32xf32>
    %31 = arith.mulf %23, %30 : vector<8x32xf32>
    %c0_12 = arith.constant 0 : index
    %c0_13 = arith.constant 0 : index
    %32 = vector.load %arg5[%c0_12, %c0_13] : memref<8x32xf32, #tpu.memory_space<vmem>>, vector<8x32xf32>
    %33 = arith.mulf %32, %32 : vector<8x32xf32>
    %cst_14 = arith.constant dense<0.000000e+00> : vector<8xf32>
    %34 = vector.multi_reduction <add>, %33, %cst_14 [1] : vector<8x32xf32> to vector<8xf32>
    %35 = vector.shape_cast %34 : vector<8xf32> to vector<8x1xf32>
    %cst_15 = arith.constant 1.000000e-24 : f32
    %36 = vector.broadcast %cst_15 : f32 to vector<8x1xf32>
    %37 = arith.maximumf %35, %36 : vector<8x1xf32>
    %38 = math.rsqrt %37 : vector<8x1xf32>
    %39 = vector.broadcast %38 : vector<8x1xf32> to vector<8x32xf32>
    %40 = arith.mulf %32, %39 : vector<8x32xf32>
    %41 = tpu.iota {dimensions = array<i32: 0>} : vector<8x1xi32>
    %c8_i32 = arith.constant 8 : i32
    %42 = arith.muli %arg0, %c8_i32 : i32
    %43 = vector.broadcast %42 : i32 to vector<8x1xi32>
    %44 = arith.addi %41, %43 : vector<8x1xi32>
    %45 = tpu.iota {dimensions = array<i32: 1>} : vector<1x8xi32>
    %c8_i32_16 = arith.constant 8 : i32
    %46 = arith.muli %arg1, %c8_i32_16 : i32
    %47 = vector.broadcast %46 : i32 to vector<1x8xi32>
    %48 = arith.addi %45, %47 : vector<1x8xi32>
    %c16_i32 = arith.constant 16 : i32
    %49 = vector.broadcast %c16_i32 : i32 to vector<8x1xi32>
    %50 = arith.cmpi slt, %44, %49 : vector<8x1xi32>
    %51 = arith.extui %50 : vector<8x1xi1> to vector<8x1xi32>
    %52 = arith.sitofp %51 : vector<8x1xi32> to vector<8x1xf32>
    %c16_i32_17 = arith.constant 16 : i32
    %53 = vector.broadcast %c16_i32_17 : i32 to vector<1x8xi32>
    %54 = arith.cmpi slt, %48, %53 : vector<1x8xi32>
    %55 = arith.extui %54 : vector<1x8xi1> to vector<1x8xi32>
    %56 = arith.sitofp %55 : vector<1x8xi32> to vector<1x8xf32>
    %c0_i32_18 = arith.constant 0 : i32
    %57 = arith.cmpi eq, %arg1, %c0_i32_18 : i32
    %58 = arith.extui %57 : i1 to i32
    %c0_i32_19 = arith.constant 0 : i32
    %59 = arith.cmpi ne, %58, %c0_i32_19 : i32
    scf.if %59 {
      %112 = arith.subf %13, %22 : vector<8x32xf32>
      %113 = arith.mulf %112, %112 : vector<8x32xf32>
      %cst_36 = arith.constant dense<0.000000e+00> : vector<8xf32>
      %114 = vector.multi_reduction <add>, %113, %cst_36 [1] : vector<8x32xf32> to vector<8xf32>
      %115 = vector.shape_cast %114 : vector<8xf32> to vector<8x1xf32>
      %c0_37 = arith.constant 0 : index
      %116 = memref.load %arg7[%c0_37] : memref<3xf32, #tpu.memory_space<smem>>
      %117 = arith.mulf %115, %52 : vector<8x1xf32>
      %118 = vector.shape_cast %117 : vector<8x1xf32> to vector<1x8x1xf32>
      %cst_38 = arith.constant dense<0.000000e+00> : vector<1xf32>
      %119 = vector.multi_reduction <add>, %118, %cst_38 [1, 2] : vector<1x8x1xf32> to vector<1xf32>
      %120 = vector.shape_cast %119 : vector<1xf32> to vector<1x1x1xf32>
      %121 = vector.extract %120[0, 0, 0] : f32 from vector<1x1x1xf32>
      %122 = arith.addf %116, %121 : f32
      %c0_39 = arith.constant 0 : index
      %123 = memref.load %arg7[%c0_39] : memref<3xf32, #tpu.memory_space<smem>>
      memref.store %122, %arg7[%c0_39] : memref<3xf32, #tpu.memory_space<smem>>
    } else {
    }
    %60 = vector.broadcast %52 : vector<8x1xf32> to vector<8x8xf32>
    %61 = vector.broadcast %56 : vector<1x8xf32> to vector<8x8xf32>
    %62 = arith.mulf %60, %61 : vector<8x8xf32>
    %63 = vector.broadcast %44 : vector<8x1xi32> to vector<8x8xi32>
    %64 = vector.broadcast %48 : vector<1x8xi32> to vector<8x8xi32>
    %65 = arith.cmpi ne, %63, %64 : vector<8x8xi32>
    %66 = arith.extui %65 : vector<8x8xi1> to vector<8x8xi32>
    %67 = arith.sitofp %66 : vector<8x8xi32> to vector<8x8xf32>
    %68 = arith.mulf %62, %67 : vector<8x8xf32>
    %69 = tpu.transpose %31, [1, 0] : vector<8x32xf32> -> vector<32x8xf32>
    %cst_20 = arith.constant dense<0.000000e+00> : vector<8x8xf32>
    %70 = tpu.matmul %13, %69, %cst_20 {dimension_numbers = #tpu.dot_dimension_numbers<[1], [0], [0], [1], [0, 0, 1, 1], [], []>} : vector<8x32xf32>, vector<32x8xf32>, vector<8x8xf32> -> vector<8x8xf32>
    %71 = tpu.transpose %40, [1, 0] : vector<8x32xf32> -> vector<32x8xf32>
    %cst_21 = arith.constant dense<0.000000e+00> : vector<8x8xf32>
    %72 = tpu.matmul %22, %71, %cst_21 {dimension_numbers = #tpu.dot_dimension_numbers<[1], [0], [0], [1], [0, 0, 1, 1], [], []>} : vector<8x32xf32>, vector<32x8xf32>, vector<8x8xf32> -> vector<8x8xf32>
    %cst_22 = arith.constant 2.000000e+00 : f32
    %73 = vector.broadcast %cst_22 : f32 to vector<8x8xf32>
    %74 = arith.mulf %73, %70 : vector<8x8xf32>
    %cst_23 = arith.constant 2.000000e+00 : f32
    %75 = vector.broadcast %cst_23 : f32 to vector<8x8xf32>
    %76 = arith.subf %75, %74 : vector<8x8xf32>
    %cst_24 = arith.constant 0.000000e+00 : f32
    %77 = vector.broadcast %cst_24 : f32 to vector<8x8xf32>
    %78 = arith.maximumf %76, %77 : vector<8x8xf32>
    %cst_25 = arith.constant -2.000000e+00 : f32
    %79 = vector.broadcast %cst_25 : f32 to vector<8x8xf32>
    %80 = arith.mulf %79, %78 : vector<8x8xf32>
    %81 = math.exp %80 : vector<8x8xf32>
    %cst_26 = arith.constant 2.000000e+00 : f32
    %82 = vector.broadcast %cst_26 : f32 to vector<8x8xf32>
    %83 = arith.mulf %82, %72 : vector<8x8xf32>
    %cst_27 = arith.constant 2.000000e+00 : f32
    %84 = vector.broadcast %cst_27 : f32 to vector<8x8xf32>
    %85 = arith.subf %84, %83 : vector<8x8xf32>
    %cst_28 = arith.constant 0.000000e+00 : f32
    %86 = vector.broadcast %cst_28 : f32 to vector<8x8xf32>
    %87 = arith.maximumf %85, %86 : vector<8x8xf32>
    %cst_29 = arith.constant -2.000000e+00 : f32
    %88 = vector.broadcast %cst_29 : f32 to vector<8x8xf32>
    %89 = arith.mulf %88, %87 : vector<8x8xf32>
    %90 = math.exp %89 : vector<8x8xf32>
    %c1 = arith.constant 1 : index
    %91 = memref.load %arg7[%c1] : memref<3xf32, #tpu.memory_space<smem>>
    %92 = arith.mulf %81, %68 : vector<8x8xf32>
    %93 = vector.shape_cast %92 : vector<8x8xf32> to vector<1x8x8xf32>
    %cst_30 = arith.constant dense<0.000000e+00> : vector<1xf32>
    %94 = vector.multi_reduction <add>, %93, %cst_30 [1, 2] : vector<1x8x8xf32> to vector<1xf32>
    %95 = vector.shape_cast %94 : vector<1xf32> to vector<1x1x1xf32>
    %96 = vector.extract %95[0, 0, 0] : f32 from vector<1x1x1xf32>
    %97 = arith.addf %91, %96 : f32
    %c1_31 = arith.constant 1 : index
    %98 = memref.load %arg7[%c1_31] : memref<3xf32, #tpu.memory_space<smem>>
    memref.store %97, %arg7[%c1_31] : memref<3xf32, #tpu.memory_space<smem>>
    %c2 = arith.constant 2 : index
    %99 = memref.load %arg7[%c2] : memref<3xf32, #tpu.memory_space<smem>>
    %100 = arith.mulf %90, %68 : vector<8x8xf32>
    %101 = vector.shape_cast %100 : vector<8x8xf32> to vector<1x8x8xf32>
    %cst_32 = arith.constant dense<0.000000e+00> : vector<1xf32>
    %102 = vector.multi_reduction <add>, %101, %cst_32 [1, 2] : vector<1x8x8xf32> to vector<1xf32>
    %103 = vector.shape_cast %102 : vector<1xf32> to vector<1x1x1xf32>
    %104 = vector.extract %103[0, 0, 0] : f32 from vector<1x1x1xf32>
    %105 = arith.addf %99, %104 : f32
    %c2_33 = arith.constant 2 : index
    %106 = memref.load %arg7[%c2_33] : memref<3xf32, #tpu.memory_space<smem>>
    memref.store %105, %arg7[%c2_33] : memref<3xf32, #tpu.memory_space<smem>>
    %c1_i32 = arith.constant 1 : i32
    %107 = arith.cmpi eq, %arg0, %c1_i32 : i32
    %c1_i32_34 = arith.constant 1 : i32
    %108 = arith.cmpi eq, %arg1, %c1_i32_34 : i32
    %109 = arith.andi %107, %108 : i1
    %110 = arith.extui %109 : i1 to i32
    %c0_i32_35 = arith.constant 0 : i32
    %111 = arith.cmpi ne, %110, %c0_i32_35 : i32
    scf.if %111 {
      %c0_36 = arith.constant 0 : index
      %112 = memref.load %arg7[%c0_36] : memref<3xf32, #tpu.memory_space<smem>>
      %cst_37 = arith.constant 6.250000e-02 : f32
      %113 = arith.mulf %112, %cst_37 : f32
      %c1_38 = arith.constant 1 : index
      %114 = memref.load %arg7[%c1_38] : memref<3xf32, #tpu.memory_space<smem>>
      %cst_39 = arith.constant 0.00416666688 : f32
      %115 = arith.mulf %114, %cst_39 : f32
      %116 = math.log %115 : f32
      %c2_40 = arith.constant 2 : index
      %117 = memref.load %arg7[%c2_40] : memref<3xf32, #tpu.memory_space<smem>>
      %cst_41 = arith.constant 0.00416666688 : f32
      %118 = arith.mulf %117, %cst_41 : f32
      %119 = math.log %118 : f32
      %120 = arith.addf %116, %119 : f32
      %cst_42 = arith.constant 5.000000e-01 : f32
      %121 = arith.mulf %cst_42, %120 : f32
      %122 = arith.addf %113, %121 : f32
      %c0_43 = arith.constant 0 : index
      %123 = memref.load %arg6[%c0_43] : memref<1xf32, #tpu.memory_space<smem>>
      memref.store %122, %arg6[%c0_43] : memref<1xf32, #tpu.memory_space<smem>>
    } else {
    }
    return
  }
  func.func @transform_0(%arg0: i32, %arg1: i32) -> (i32, i32) {
    %c0_i32 = arith.constant 0 : i32
    %c0_i32_0 = arith.constant 0 : i32
    return %arg0, %c0_i32 : i32, i32
  }
  func.func @transform_1(%arg0: i32, %arg1: i32) -> (i32, i32) {
    %c0_i32 = arith.constant 0 : i32
    %c0_i32_0 = arith.constant 0 : i32
    return %arg0, %c0_i32 : i32, i32
  }
  func.func @transform_2(%arg0: i32, %arg1: i32) -> (i32, i32) {
    %c0_i32 = arith.constant 0 : i32
    %c0_i32_0 = arith.constant 0 : i32
    return %arg1, %c0_i32 : i32, i32
  }
  func.func @transform_3(%arg0: i32, %arg1: i32) -> (i32, i32) {
    %c0_i32 = arith.constant 0 : i32
    %c0_i32_0 = arith.constant 0 : i32
    return %arg1, %c0_i32 : i32, i32
  }
  func.func @transform_4(%arg0: i32, %arg1: i32) -> i32 {
    %c0_i32 = arith.constant 0 : i32
    %c0_i32_0 = arith.constant 0 : i32
    return %c0_i32 : i32
  }
}

</mosaic_0001>

<bundles_post_ra>
// kernel: tpu_custom_call.1
= control target key start
LH: loop header
LB: loop body
LE: loop exit
PB: predicated region body
PF: predicated region fallthrough
CT: control target
= control target key end

     0   :  { %s1612_s0 = inlined_call_operand.hbm [shape: f32[16,32], index: 0, kind: input, shape index: {}]   ;;  %s1613_s1 = inlined_call_operand.hbm [shape: f32[16,32], index: 1, kind: input, shape index: {}]   ;;  %s1614_s2 = inlined_call_operand.hbm [shape: f32[16,32], index: 2, kind: input, shape index: {}]   ;;  %s1615_s3 = inlined_call_operand.hbm [shape: f32[16,32], index: 3, kind: input, shape index: {}]   ;;  %s1616_s4 = inlined_call_operand.hbm [shape: f32[1], index: 4, kind: output, shape index: {}]  }
   0x1   :  { %1626 = sst [smem:[#allocation20_spill]] %s1612_s0 }
   0x2   :  { %1627 = sst [smem:[#allocation21_spill]] %s1613_s1 }
   0x3   :  { %1628 = sst [smem:[#allocation22_spill]] %s1614_s2 }
   0x4   :  { %9 = vsyncpa [#allocation4], 0 }
   0x5   :  { %11 = vsyncpa [#allocation4 + $0x1], 0 }
   0x6   :  { %12 = vsyncpa [#allocation7], 0 }
   0x7   :  { %14 = vsyncpa [#allocation7 + $0x1], 0 }
   0x8   :  { %15 = vsyncpa [#allocation10], 0 }
   0x9   :  { %17 = vsyncpa [#allocation10 + $0x1], 0 }
   0xa   :  { %18 = vsyncpa [#allocation5], 0  ;;  %s1236_s15 = smov 0   ;;  %s1238_s16 = smov 0  }
   0xb   :  { %s1240_s17 = smov 0   ;;  %s1242_s18 = smov 0  }
   0xc   :  { %s1244_s19 = smov 0   ;;  %s1246_s20 = smov 0  }
   0xd   :  { %s1248_s21 = smov 0   ;;  %s1250_s22 = smov 0  }
   0xe   :  { %s1252_s23 = smov 0   ;;  %s1254_s24 = smov 0  }
   0xf   :  { %s1256_s25 = smov 0  }
  0x10 LB: > { %1629 = sst [smem:[#allocation17_spill]] %s1201_s25  ;;  %s1288_s26 = sadd.s32 4294967295, %s1201_s25   ;;  %s1201_s25 = sphi %s1256_s25, %s1665_s25   ;;  %s1197_s24 = sphi %s1254_s24, %s1664_s24   ;;  %s1193_s23 = sphi %s1252_s23, %s1663_s23   ;;  %s1189_s22 = sphi %s1250_s22, %s1662_s22   ;;  %s1185_s21 = sphi %s1248_s21, %s1661_s21   ;;  %s1181_s20 = sphi %s1246_s20, %s1660_s20   ;;  %s1177_s19 = sphi %s1244_s19, %s1659_s19   ;;  %s1173_s18 = sphi %s1242_s18, %s1658_s18   ;;  %s1169_s17 = sphi %s1240_s17, %s1657_s17   ;;  %s1165_s16 = sphi %s1238_s16, %s1656_s16   ;;  %s1161_s15 = sphi %s1236_s15, %s1655_s15  }
  0x11   : > { %p50_p0 = scmp.ne.s32.totalorder %s1181_s20, %s1177_s19  ;;  %p51_p1 = scmp.eq.s32.totalorder %s1201_s25, 0 }
  0x12   : > { %p56_p2 = scmp.ne.s32.totalorder %s1177_s19, %s1173_s18  ;;  %p57_p3 = scmp.eq.s32.totalorder %s1288_s26, 0 }
  0x13   : > { %p102_p4 = scmp.ne.s32.totalorder %s1169_s17, %s1165_s16  ;;  %p52_p5 = por %p51_p1, %p50_p0 }
  0x14   : > { %p108_p6 = scmp.ne.s32.totalorder %s1165_s16, %s1161_s15  ;;  %p1300_p7 = por %p57_p3, %p56_p2 }
  0x15   : > { %p104_p8 = por %p102_p4, %p51_p1  ;;  %p852_p10 = scmp.lt.s32.totalorder %s1201_s25, 4 }
  0x16   : > { %s1630_s29 = scalar_select %p1300_p7, 1, 0 }
  0x17   : > { %p1304_p9 = por %p108_p6, %p57_p3  ;;  %s1617_s5 = sand.u32 1, %s1181_s20  }
  0x18   : > { %s1312_s6 = sshll.u32 %s1617_s5, 3  ;;  %s769_s7 = sshll.u32 %s1197_s24, 7 }
  0x19   : > { %s1631_s30 = scalar_select %p1304_p9, 1, 0 }
  0x1a   : > { %p1315_p11 = pnand %p852_p10, %p52_p5  ;;  %s197_s9 = sand.u32 1, %s1201_s25  }
  0x1b   : > { %s1633_s1 = sld [smem:[#allocation21_spill]]  ;;  %s201_s13 = scalar_lea.vmem [#allocation6], %s1312_s6 }
  0x1c   : > { %s208_s14 = sshll.u32 %s201_s13, 4  ;;  %p1328_p12 = pnand %p852_p10, %p104_p8  ;;  %s1332_s14 = int_to_ptr.vmem [resolvable:$true] %s208_s14 }
  0x1d   : > { %s1335_s18 = scalar_lea.sflag [#allocation7], %s197_s9  ;;  %p965_p1 = pneg %p1315_p11 }
  0x1e   : > { %s1634_s15 = scalar_select %p1328_p12, 1, 0 }
  0x21   : > { %s1325_s12 = scalar_lea.hbm %s1633_s1, %s769_s7  ;;  %s968_s13 = scalar_lea.hbm %s1633_s1, 256 }
  0x22   : > { %s963_s28 = scalar_lea.hbm %s1325_s12, 128  ;;  %p969_p4 = scmp.lt.u32.totalorder %s1325_s12, %s1633_s1 }
  0x23   : > { %p964_p0 = scmp.ne.s32.totalorder %s1325_s12, %s963_s28  ;;  %p970_p5 = scmp.lt.u32.totalorder %s968_s13, %s963_s28 }
  0x24   : > { %p972_p8 = scmp.lt.u32.totalorder %s963_s28, %s1325_s12 }
  0x25   : > { %p966_p2 = pnand %p965_p1, %p964_p0  ;;  %p971_p6 = por %p970_p5, %p969_p4 }
  0x27   : > { %p967_p3 = pneg %p966_p2  ;;  %p973_p10 = por %p972_p8, %p971_p6 }
  0x29   : > { %p974_p13 = pnand %p973_p10, %p967_p3 }
  0x2b   : > { %977 = shalt.err (!%p974_p13)
}
  0x2c   : > { %s978_s9 = scalar_lea.vmem %s1332_s14, 128  ;;  %s1203_s10 = smov [#allocation6]  }
  0x2d   : > { %p979_p0 = scmp.ne.s32.totalorder %s1332_s14, %s978_s9  ;;  %s983_s11 = sshll.u32 %s1203_s10, 4  ;;  %s984_s11 = int_to_ptr.vmem [resolvable:$false] %s983_s11 }
  0x2e   : > { %s985_s27 = scalar_lea.vmem %s984_s11, 256  ;;  %p986_p7 = scmp.lt.s32.totalorder %s1332_s14, %s984_s11 }
  0x2f   : > { %p981_p2 = pnand %p979_p0, %p965_p1  ;;  %p987_p4 = scmp.lt.s32.totalorder %s985_s27, %s978_s9 }
  0x31   : > { %p982_p9 = pneg %p981_p2  ;;  %p988_p5 = por %p987_p4, %p986_p7 }
  0x33   : > { %p989_p6 = pnand %p988_p5, %p982_p9 }
  0x35   : > { %992 = shalt.err (!%p989_p6)
}
  0x36   : > { %845 = dma.hbm_to_vmem [thread:$0]  (!%p1315_p11), %s1325_s12, 128, %s1332_s14, %s1335_s18  }
  0x37   : > { %p249_p13 = scmp.lt.s32.totalorder %s1201_s25, 5  ;;  %p1635_p3 = scmp.ge.s32.totalorder %s1201_s25, 1 }
  0x38   : > { %s1637_s0 = sld [smem:[#allocation20_spill]]  ;;  %s183_s10 = scalar_lea.vmem [#allocation3], %s1312_s6 }
  0x39   : > { %p1366_p8 = pnand %p1635_p3, %p249_p13  ;;  %s190_s11 = sshll.u32 %s183_s10, 4  ;;  %s191_s11 = int_to_ptr.vmem [resolvable:$true] %s190_s11 }
  0x3a   : > { %s1638_s12 = sand.u32 1, %s1181_s20  }
  0x3b   : > { %s1636_s28 = scalar_select %p1366_p8, 1, 0 }
  0x3c   : > { %s180_s14 = scalar_lea.sflag [#allocation4], %s1638_s12 }
  0x3e   : > { %s1375_s9 = scalar_lea.hbm %s1637_s0, %s769_s7  ;;  %s998_s7 = scalar_lea.hbm %s1637_s0, 256 }
  0x3f   : > { %s993_s27 = scalar_lea.hbm %s1375_s9, 128  ;;  %p999_p0 = scmp.lt.u32.totalorder %s1375_s9, %s1637_s0 }
  0x40   : > { %p994_p7 = scmp.ne.s32.totalorder %s1375_s9, %s993_s27  ;;  %p1000_p2 = scmp.lt.u32.totalorder %s998_s7, %s993_s27 }
  0x41   : > { %p1002_p5 = scmp.lt.u32.totalorder %s993_s27, %s1375_s9 }
  0x42   : > { %p996_p9 = pnand %p994_p7, %p965_p1  ;;  %p1001_p4 = por %p1000_p2, %p999_p0 }
  0x44   : > { %p997_p10 = pneg %p996_p9  ;;  %p1003_p6 = por %p1002_p5, %p1001_p4 }
  0x46   : > { %p1004_p13 = pnand %p1003_p6, %p997_p10 }
  0x48   : > { %1007 = shalt.err (!%p1004_p13)
}
  0x49   : > { %s1008_s6 = scalar_lea.vmem %s191_s11, 128  ;;  %s1204_s10 = smov [#allocation3]  }
  0x4a   : > { %p1009_p3 = scmp.ne.s32.totalorder %s191_s11, %s1008_s6  ;;  %s1013_s1 = sshll.u32 %s1204_s10, 4  ;;  %s1014_s1 = int_to_ptr.vmem [resolvable:$false] %s1013_s1 }
  0x4b   : > { %s1015_s25 = scalar_lea.vmem %s1014_s1, 256  ;;  %p1016_p8 = scmp.lt.s32.totalorder %s191_s11, %s1014_s1 }
  0x4c   : > { %p1011_p7 = pnand %p1009_p3, %p965_p1  ;;  %p1017_p12 = scmp.lt.s32.totalorder %s1015_s25, %s1008_s6 }
  0x4e   : > { %p1012_p9 = pneg %p1011_p7  ;;  %p1018_p0 = por %p1017_p12, %p1016_p8 }
  0x50   : > { %p1019_p2 = pnand %p1018_p0, %p1012_p9 }
  0x52   : > { %1022 = shalt.err (!%p1019_p2)
}
  0x53   : > { %842 = dma.hbm_to_vmem [thread:$0]  (!%p1315_p11), %s1375_s9, 128, %s191_s11, %s180_s14  }
  0x54   : > { %s33_s12 = sadd.s32 1, %s1193_s23  ;;  %s95_s27 = sadd.s32 1, %s1169_s17 }
  0x55   : > { %p34_p12 = scmp.ge.s32.totalorder %s33_s12, 2  ;;  %s1622_s7 = sand.u32 1, %s1169_s17  }
  0x56   : > { %s1404_s5 = sshll.u32 %s1622_s7, 3  ;;  %s1623_s8 = sshll.u32 %s1193_s23, 7 }
  0x57   : > { %s1667_s12 = smov (%p34_p12, %s33_s12), 0  ;;  %s1640_s13 = sadd.s32 1, %s1197_s24 }
  0x58   : > { %1639 = sst [smem:[#allocation18_spill]] %s1667_s12  ;;  %s1669_s13 = smov (!%p34_p12, %s1640_s13), %s1197_s24 }
  0x59   : > { %s92_s6 = ssub.s32 %s1193_s23, %s1667_s12  ;;  %p38_p11 = scmp.ge.s32.totalorder %s1669_s13, 2 }
  0x5a   : > { %p93_p1 = scmp.eq.s32.totalorder %s92_s6, 0  ;;  %s1641_s2 = sld [smem:[#allocation22_spill]] }
  0x5b   : > { %s219_s10 = scalar_lea.vmem [#allocation8], %s1404_s5  ;;  %s1671_s13 = smov (%p38_p11, %s1669_s13), 0 }
  0x5c   : > { %s226_s1 = sshll.u32 %s219_s10, 4  ;;  %1642 = sst [smem:[#allocation19_spill]] %s1671_s13  ;;  %s1429_s1 = int_to_ptr.vmem [resolvable:$true] %s226_s1 }
  0x5d   : > { %s1425_s25 = scalar_select %p93_p1, %s1169_s17, %s95_s27  }
  0x5e   : > { %s40_s7 = ssub.s32 %s1197_s24, %s1671_s13  ;;  %p1644_p4 = scmp.ne.s32.totalorder %s1634_s15, 0 }
  0x5f   : > { %p1431_p8 = scmp.eq.s32.totalorder %s40_s7, 0 }
  0x60   : > { %s1419_s14 = scalar_lea.hbm %s1641_s2, %s1623_s8  ;;  %p1025_p5 = pneg %p1644_p4 }
  0x61   : > { %s1023_s9 = scalar_lea.hbm %s1419_s14, 128  ;;  %s1028_s27 = scalar_lea.hbm %s1641_s2, 256 }
  0x62   : > { %p1024_p10 = scmp.ne.s32.totalorder %s1419_s14, %s1023_s9  ;;  %p1029_p3 = scmp.lt.u32.totalorder %s1419_s14, %s1641_s2 }
  0x63   : > { %p1030_p7 = scmp.lt.u32.totalorder %s1028_s27, %s1023_s9  ;;  %p1032_p0 = scmp.lt.u32.totalorder %s1023_s9, %s1419_s14 }
  0x64   : > { %p1026_p6 = pnand %p1025_p5, %p1024_p10 }
  0x65   : > { %p1031_p9 = por %p1030_p7, %p1029_p3 }
  0x66   : > { %p1027_p13 = pneg %p1026_p6 }
  0x67   : > { %p1033_p2 = por %p1032_p0, %p1031_p9 }
  0x69   : > { %p1034_p12 = pnand %p1033_p2, %p1027_p13 }
  0x6b   : > { %1037 = shalt.err (!%p1034_p12)
}
  0x6c   : > { %s1038_s7 = scalar_lea.vmem %s1429_s1, 128  ;;  %s1205_s11 = smov [#allocation8]  }
  0x6d   : > { %p1039_p11 = scmp.ne.s32.totalorder %s1429_s1, %s1038_s7  ;;  %s1043_s10 = sshll.u32 %s1205_s11, 4  ;;  %s1044_s10 = int_to_ptr.vmem [resolvable:$false] %s1043_s10 }
  0x6e   : > { %s1045_s0 = scalar_lea.vmem %s1044_s10, 256  ;;  %p1046_p6 = scmp.lt.s32.totalorder %s1429_s1, %s1044_s10 }
  0x6f   : > { %p1041_p1 = pnand %p1039_p11, %p1025_p5  ;;  %p1047_p3 = scmp.lt.s32.totalorder %s1045_s0, %s1038_s7 }
  0x71   : > { %p1042_p10 = pneg %p1041_p1  ;;  %p1048_p7 = por %p1047_p3, %p1046_p6 }
  0x73   : > { %p1049_p9 = pnand %p1048_p7, %p1042_p10 }
  0x75   : > { %1052 = shalt.err (!%p1049_p9)
}
  0x76   : > { %848 = dma.hbm_to_vmem [thread:$0]  (!%p1644_p4), %s1419_s14, 128, %s1429_s1, %s1335_s18  }
  0x77   : > { %s1645_s8 = sadd.s32 1, %s1181_s20  ;;  %s1646_s27 = sshll.u32 %s1193_s23, 7 }
  0x78   : > { %s1466_s9 = scalar_select %p1431_p8, %s1181_s20, %s1645_s8  }
  0x79   : > { %s1473_s10 = scalar_lea.hbm %s1615_s3, %s1646_s27  ;;  %s237_s0 = scalar_lea.vmem [#allocation9], %s1404_s5 }
  0x7a   : > { %s244_s2 = sshll.u32 %s237_s0, 4  ;;  %s1647_s13 = sand.u32 1, %s1169_s17   ;;  %s245_s2 = int_to_ptr.vmem [resolvable:$true] %s244_s2 }
  0x7b   : > { %s234_s12 = scalar_lea.sflag [#allocation10], %s1647_s13  ;;  %s1053_s18 = scalar_lea.hbm %s1473_s10, 128 }
  0x7c   : > { %p1054_p13 = scmp.ne.s32.totalorder %s1473_s10, %s1053_s18  ;;  %s1058_s6 = scalar_lea.hbm %s1615_s3, 256 }
  0x7d   : > { %p1059_p2 = scmp.lt.u32.totalorder %s1473_s10, %s1615_s3  ;;  %p1060_p12 = scmp.lt.u32.totalorder %s1058_s6, %s1053_s18 }
  0x7e   : > { %p1056_p8 = pnand %p1054_p13, %p1025_p5  ;;  %p1062_p1 = scmp.lt.u32.totalorder %s1053_s18, %s1473_s10 }
  0x7f   : > { %p1061_p11 = por %p1060_p12, %p1059_p2 }
  0x80   : > { %p1057_p0 = pneg %p1056_p8 }
  0x81   : > { %p1063_p10 = por %p1062_p1, %p1061_p11 }
  0x83   : > { %p1064_p6 = pnand %p1063_p10, %p1057_p0 }
  0x85   : > { %1067 = shalt.err (!%p1064_p6)
}
  0x86   : > { %s1068_s5 = scalar_lea.vmem %s245_s2, 128  ;;  %s1206_s13 = smov [#allocation9]  }
  0x87   : > { %p1069_p3 = scmp.ne.s32.totalorder %s245_s2, %s1068_s5  ;;  %s1073_s7 = sshll.u32 %s1206_s13, 4  ;;  %s1074_s7 = int_to_ptr.vmem [resolvable:$false] %s1073_s7 }
  0x88   : > { %s1075_s11 = scalar_lea.vmem %s1074_s7, 256  ;;  %p1076_p13 = scmp.lt.s32.totalorder %s245_s2, %s1074_s7 }
  0x89   : > { %p1071_p7 = pnand %p1069_p3, %p1025_p5  ;;  %p1077_p8 = scmp.lt.s32.totalorder %s1075_s11, %s1068_s5 }
  0x8b   : > { %p1072_p9 = pneg %p1071_p7  ;;  %p1078_p2 = por %p1077_p8, %p1076_p13 }
  0x8d   : > { %p1079_p12 = pnand %p1078_p2, %p1072_p9 }
  0x8f   : > { %1082 = shalt.err (!%p1079_p12)
}
  0x90   : > { %851 = dma.hbm_to_vmem [thread:$0]  (!%p1644_p4), %s1473_s10, 128, %s245_s2, %s234_s12  }
  0x91   : > { %p1648_p0 = scmp.ne.s32.totalorder %s1636_s28, 0 }
  0x92   : > { %s255_s0 = sand.u32 (!%p1648_p0), 1, %s1177_s19   ;;  %p1649_p5 = scmp.ne.s32.totalorder (!%p1648_p0), %s1630_s29, 0 }
  0x93   : > { %253 = sbr.rel (%p1648_p0) target bundleno = 1232 (0x4d0), region = 36  ;;  %s1500_s18 = sshll.u32 (!%p1648_p0), %s255_s0, 3 }
  0x94   : > { %s256_s14 = scalar_lea.sflag (!%p1648_p0), [#allocation4], %s255_s0  ;;  %s259_s1 = scalar_lea.vmem (!%p1648_p0), [#allocation3], %s1500_s18 }
  0x9a   : > { %1140 = dma.done.wait (%p1649_p5), %s256_s14, 128  }
  0x9b   : > { %1142 = vsyncadd (%p1649_p5), %s256_s14, 4294967168  ;;  %s264_s2 = sand.u32 1, %s1288_s26   ;;  %s268_s28 = scalar_lea.vmem [#allocation6], %s1500_s18 }
  0x9c   : > { %s265_s15 = scalar_lea.sflag [#allocation7], %s264_s2 }
  0x9d   : > { %1144 = dma.done.wait (%p1649_p5), %s265_s15, 128  }
  0x9e   : > { %1146 = vsyncadd (%p1649_p5), %s265_s15, 4294967168  ;;  %s275_s12 = sand.u32 1, %s1165_s16   ;;  %p1650_p4 = scmp.ne.s32.totalorder %s1631_s30, 0 }
  0x9f   : > { %s779_s10 = sshll.u32 %s275_s12, 3 }
  0xa0   : > { %s277_s6 = scalar_lea.vmem [#allocation8], %s779_s10 }
  0xa1   : > { %1148 = dma.done.wait (%p1650_p4), %s265_s15, 128  }
  0xa2   : > { %1150 = vsyncadd (%p1650_p4), %s265_s15, 4294967168  ;;  %s283_s8 = scalar_lea.sflag [#allocation10], %s275_s12  ;;  %s286_s27 = scalar_lea.vmem [#allocation9], %s779_s10 }
  0xa3   : > { %1152 = dma.done.wait (%p1650_p4), %s283_s8, 128  }
  0xa4   : > { %1154 = vsyncadd (%p1650_p4), %s283_s8, 4294967168  ;;  %p321_p11 = scmp.eq.s32.totalorder %s1189_s22, 0  ;;  %p322_p1 = scmp.eq.s32.totalorder %s1185_s21, 0  ;;  %vm335_vm0 = vcmask 261120   ;;  %v350_v0 = vld [vmem:[%s277_s6] sm:$0xff]  ;;  %v358_v2 = vld [vmem:[%s286_s27] sm:$0xff]  ;;  %v366_v12 = vlaneseq }
  0xa5   : > { %s1207_s29 = smov 0.0   ;;  %v333_v1 = vld [vmem:[%s259_s1] sm:$0xff]  ;;  %v351_v3 = vmul.f32 %v350_v0, %v350_v0  ;;  %v359_v5 = vmul.f32 %v358_v2, %v358_v2  ;;  %v342_v6 = vld [vmem:[%s268_s28] sm:$0xff]  ;;  %s781_s30 = sshll.u32 %s1189_s22, 3  ;;  %v1208_v19 = vmov 0.0  }
  0xa6   : > { %p323_p10 = pnand %p322_p1, %p321_p11  ;;  %v334_v4 = vmul.f32 %v333_v1, %v333_v1  ;;  %v343_v7 = vmul.f32 %v342_v6, %v342_v6  ;;  %v367_v13 = vshrl.u32 %v366_v12, 7  ;;  %v372_v14 = vand.u32 127, %v366_v12  ;;  %s782_s5 = sshll.u32 %s1185_s21, 3 }
  0xa7   : > { %v352_v8 = vsel %vm335_vm0, %v351_v3, 0.0  ;;  %v360_v10 = vsel %vm335_vm0, %v359_v5, 0.0  ;;  %v369_v15 = vstv %s781_s30  ;;  %v374_v16 = vstv %s782_s5  ;;  %p785_p6 = scmp.ne.s32.totalorder %s1185_s21, 0 }
  0xa8   : > { %832 = sst [smem:[#allocation2]] (!%p323_p10), %s1207_s29  ;;  %v336_v9 = vsel %vm335_vm0, %v334_v4, 0.0  ;;  %353 = vadd.xlane.f32.xlu1 %v352_v8  ;;  %v344_v11 = vsel %vm335_vm0, %v343_v7, 0.0  ;;  %v1530_v17 = vadd.s32 %v369_v15, %v367_v13  ;;  %v1532_v18 = vadd.s32 %v374_v16, %v372_v14 }
  0xa9   : > { %833 = sst [smem:[#allocation2 + $0x1]] (!%p323_p10), %s1207_s29  ;;  %337 = vadd.xlane.f32.xlu0 %v336_v9  ;;  %vm392_vm3 = vcmask (!%p785_p6), 7168   ;;  %s390_s13 = sld [smem:[#allocation2]] (!%p785_p6) }
  0xaa   : > { %834 = sst [smem:[#allocation2 + $0x2]] (!%p323_p10), %s1207_s29  ;;  %vm376_vm1 = vcmp.lt.s32.totalorder %v1530_v17, 16  ;;  %vm379_vm2 = vcmp.lt.s32.totalorder %v1532_v18, 16 }
  0xab   : > { %v1537_v20 = vsel %vm376_vm1, 1.0, %v1208_v19  ;;  %v1540_v21 = vsel %vm379_vm2, 1.0, %v1208_v19 }
  0xac   : > { %361 = vadd.xlane.f32.xlu1 %v360_v10 }
  0xad   : > { %345 = vadd.xlane.f32.xlu0 %v344_v11 }
 0x135   : > { %v354_v22 = vpop.xlane.xlu1 %353 }
 0x136   : > { %v338_v23 = vpop.xlane.xlu0 %337  ;;  %v355_v24 = vmax.f32 %v354_v22, 1e-24 }
 0x137   : > { %v339_v25 = vmax.f32 %v338_v23, 1e-24 }
 0x138   : > { %947 = vrsqrt.f32 %v355_v24 }
 0x139   : > { %949 = vrsqrt.f32 %v339_v25  ;;  %v362_v26 = vpop.xlane.xlu1 %361 }
 0x13a   : > { %v346_v27 = vpop.xlane.xlu0 %345  ;;  %v363_v28 = vmax.f32 %v362_v26, 1e-24 }
 0x13b   : > { %v347_v29 = vmax.f32 %v346_v27, 1e-24 }
 0x13c   : > { %951 = vrsqrt.f32 %v363_v28 }
 0x13d   : > { %953 = vrsqrt.f32 %v347_v29 }
 0x142   : > { %v948_v30 = vpop.eup %947  ;;  %384 = sbr.rel (%p785_p6) target bundleno = 687 (0x2af), region = 60 }
 0x143   : > { %v950_v31 = vpop.eup %949  ;;  %v357_v32 = vmul.f32 %v948_v30, %v350_v0 }
 0x144   : > { %v341_v33 = vmul.f32 %v950_v31, %v333_v1 }
 0x146   : > { %v952_v34 = vpop.eup %951 }
 0x147   : > { %v954_v35 = vpop.eup %953  ;;  %v365_v36 = vmul.f32 %v952_v34, %v358_v2 }
 0x148   : > { %v349_v37 = vmul.f32 %v954_v35, %v342_v6 }
 0x14a   : > { %v385_v38 = vsub.f32 %v341_v33, %v349_v37 }
 0x14c   : > { %v386_v39 = vmul.f32 %v385_v38, %v385_v38 }
 0x14e   : > { %v387_v40 = vsel %vm335_vm0, %v386_v39, 0.0 }
 0x14f   : > { %388 = vadd.xlane.f32.xlu0 %v387_v40 }
 0x1dc   : > { %v389_v41 = vpop.xlane.xlu0 %388 }
 0x1dd   : > { %v391_v42 = vmul.f32 %v1537_v20, %v389_v41 }
 0x1df   : > { %v393_v43 = vsel %vm392_vm3, %v391_v42, 0.0 }
 0x1e0   : > { %394 = vadd.xlane.f32.xlu0 %v393_v43 }
 0x26d   : > { %v395_v44 = vpop.xlane.xlu0 %394 }
 0x26e   : > { %v396_v45 = vrot.slane %v395_v44, 4 }
 0x270   : > { %v397_v46 = vadd.f32 %v396_v45, %v395_v44 }
 0x272   : > { %v398_v47 = vrot.slane %v397_v46, 2 }
 0x274   : > { %v399_v48 = vadd.f32 %v398_v47, %v397_v46 }
 0x276   : > { %v400_v49 = vrot.slane %v399_v48, 1 }
 0x278   : > { %v401_v50 = vadd.f32 %v400_v49, %v399_v48 }
 0x27a   : > { %813 = vpush %v401_v50 }
 0x2ab   : > { %s814_s7 = spop %813 }
 0x2ac   : > { %s403_s11 = sadd.f32 %s814_s7, %s390_s13 }
 0x2ae   : > { %405 = sst [smem:[#allocation2]] %s403_s11 }
 0x2af PF: > { %803 = vmatprep.subr.mxu0 %v1208_v19  ;;  %808 = vmatprep.subr.mxu1 %v1208_v19  ;;  %vm1209_vm4 = vmmov 0   ;;  %vm407_vm5 = vcmp.ne.s32.totalorder %v1530_v17, %v1532_v18  ;;  %v406_v1 = vmul.f32 %v1540_v21, %v1537_v20  ;;  %vm577_vm6 = vcmask 64512   ;;  %p606_p3 = scmp.eq.s32.totalorder %s1189_s22, 1  ;;  %p607_p7 = scmp.eq.s32.totalorder %s1185_s21, 1 }
 0x2b0   : > { %804 = vmatpush3.xpose.msk.msra.mxu0 %vm335_vm0, %v357_v32  ;;  %805 = vmatprep.mubr.msk.f32.mxu0 %vm1209_vm4, %v1208_v19  ;;  %v786_v2 = vsel %vm407_vm5, 1.0, %v1208_v19  ;;  %s791_s21 = sld [smem:[#allocation2 + $0x1]]  ;;  %s792_s22 = sld [smem:[#allocation2 + $0x2]] }
 0x2b1   : > { %809 = vmatpush3.xpose.msk.msra.mxu1 %vm335_vm0, %v365_v36  ;;  %810 = vmatprep.mubr.msk.f32.mxu1 %vm1209_vm4, %v1208_v19  ;;  %v410_v3 = vmul.f32 %v786_v2, %v406_v1  ;;  %p1560_p9 = pnand %p607_p7, %p606_p3 }
 0x2b2   : > { %s612_s6 = sld [smem:[#allocation2]] (!%p1560_p9) }
 0x2b3   : > { %806 = vmatmul.mubr.msk.f32.vlgmr.msra.gmra.mrb[0].mxu0 %vm335_vm0, %v341_v33 }
 0x2b4   : > { %811 = vmatmul.mubr.msk.f32.vlgmr.msra.gmra.mrb[0].mxu1 %vm335_vm0, %v349_v37 }
 0x2b8   : > { %s613_s29 = smul.f32 (!%p1560_p9), 0.0625, %s612_s6 }
 0x386   : > { %v483_v51 = vpop.f32.mrb[0].mxu0 }
 0x387   : > { %v563_v52 = vmul.f32 2.0, %v483_v51  ;;  %v807_v53 = vpop.f32.mrb[1].mxu0  ;;  %v559_v54 = vpop.f32.mrb[0].mxu1 }
 0x388   : > { %v569_v55 = vmul.f32 2.0, %v559_v54  ;;  %v812_v56 = vpop.f32.mrb[1].mxu1 }
 0x389   : > { %v564_v57 = vsub.f32 2.0, %v563_v52 }
 0x38a   : > { %v570_v58 = vsub.f32 2.0, %v569_v55 }
 0x38b   : > { %v565_v59 = vmax.f32 %v564_v57, 0.0 }
 0x38c   : > { %v571_v60 = vmax.f32 %v570_v58, 0.0 }
 0x38d   : > { %v566_v61 = vmul.f32 -2.0, %v565_v59 }
 0x38e   : > { %v572_v62 = vmul.f32 -2.0, %v571_v60 }
 0x38f   : > { %v567_v63 = vmul.f32 1.442695, %v566_v61 }
 0x390   : > { %v573_v0 = vmul.f32 1.442695, %v572_v62 }
 0x391   : > { %955 = vpow2.f32 %v567_v63 }
 0x392   : > { %957 = vpow2.f32 %v573_v0 }
 0x39b   : > { %v956_v4 = vpop.eup %955 }
 0x39c   : > { %v958_v5 = vpop.eup %957  ;;  %v576_v6 = vmul.f32 %v956_v4, %v410_v3 }
 0x39d   : > { %v592_v7 = vmul.f32 %v958_v5, %v410_v3 }
 0x39e   : > { %v578_v8 = vsel %vm577_vm6, %v576_v6, 0.0 }
 0x39f   : > { %579 = vadd.xlane.f32.xlu0 %v578_v8  ;;  %v593_v9 = vsel %vm577_vm6, %v592_v7, 0.0 }
 0x3a3   : > { %594 = vadd.xlane.f32.xlu0 %v593_v9 }
 0x42c   : > { %v580_v10 = vpop.xlane.xlu0 %579 }
 0x42d   : > { %v581_v11 = vrot.slane %v580_v10, 4 }
 0x42f   : > { %v582_v12 = vadd.f32 %v581_v11, %v580_v10 }
 0x430   : > { %v595_v13 = vpop.xlane.xlu0 %594 }
 0x431   : > { %v583_v14 = vrot.slane %v582_v12, 2  ;;  %v596_v15 = vrot.slane %v595_v13, 4 }
 0x433   : > { %v597_v16 = vadd.f32 %v596_v15, %v595_v13  ;;  %v584_v17 = vadd.f32 %v583_v14, %v582_v12 }
 0x435   : > { %v598_v18 = vrot.slane %v597_v16, 2  ;;  %v585_v19 = vrot.slane %v584_v17, 1 }
 0x437   : > { %v599_v20 = vadd.f32 %v598_v18, %v597_v16  ;;  %v586_v21 = vadd.f32 %v585_v19, %v584_v17 }
 0x439   : > { %815 = vpush %v586_v21  ;;  %v600_v22 = vrot.slane %v599_v20, 1 }
 0x43b   : > { %v601_v23 = vadd.f32 %v600_v22, %v599_v20 }
 0x43d   : > { %817 = vpush %v601_v23 }
 0x46a   : > { %s816_s18 = spop %815 }
 0x46b   : > { %s588_s14 = sadd.f32 %s816_s18, %s791_s21  ;;  %611 = sbr.rel (%p1560_p9) target bundleno = 1217 (0x4c1), region = 64 }
 0x46d   : > { %590 = sst [smem:[#allocation2 + $0x1]] %s588_s14 }
 0x46e   : > { %s818_s1 = spop %817  ;;  %s793_s15 = sld [smem:[#allocation2 + $0x1]] (!%p1560_p9) }
 0x46f   : > { %s603_s2 = sadd.f32 %s818_s1, %s792_s22 }
 0x471   : > { %605 = sst [smem:[#allocation2 + $0x2]] %s603_s2 }
 0x472   : > { %s794_s28 = sld [smem:[#allocation2 + $0x2]] }
 0x474   : > { %s615_s12 = smul.f32 0.004166667, %s793_s15 }
 0x476   : > { %v616_v24 = vstv %s615_s12 }
 0x477   : > { %959 = vlog2.f32 %v616_v24 }
 0x478   : > { %s621_s10 = smul.f32 0.004166667, %s794_s28 }
 0x47a   : > { %v622_v25 = vstv %s621_s10 }
 0x47b   : > { %961 = vlog2.f32 %v622_v25 }
 0x481   : > { %v960_v26 = vpop.eup %959 }
 0x482   : > { %v618_v28 = vmul.f32 0.6931472, %v960_v26 }
 0x484   : > { %819 = vpush %v618_v28 }
 0x485   : > { %v962_v27 = vpop.eup %961 }
 0x486   : > { %v624_v29 = vmul.f32 0.6931472, %v962_v27 }
 0x488   : > { %821 = vpush %v624_v29 }
 0x4b5   : > { %s820_s8 = spop %819 }
 0x4b9   : > { %s822_s27 = spop %821 }
 0x4ba   : > { %s626_s30 = sadd.f32 %s822_s27, %s820_s8 }
 0x4bc   : > { %s627_s5 = smul.f32 0.5, %s626_s30 }
 0x4be   : > { %s628_s13 = sadd.f32 %s627_s5, %s613_s29 }
 0x4c0   : > { %630 = sst [smem:[#allocation11]] %s628_s13 }
 0x4c1 PF: > { %p853_p13 = scmp.eq.s32.totalorder %s1288_s26, 3  ;;  %s1083_s0 = scalar_lea.hbm %s1616_s4, 16 }
 0x4c2   : > { %p1084_p8 = scmp.ne.s32.totalorder %s1616_s4, %s1083_s0  ;;  %p1089_p0 = scmp.lt.u32.totalorder %s1083_s0, %s1616_s4 }
 0x4c4   : > { %p1085_p2 = pnand %p1084_p8, %p853_p13 }
 0x4c6   : > { %p1086_p12 = pneg %p1085_p2 }
 0x4c8   : > { %p1091_p5 = pnand %p1089_p0, %p1086_p12 }
 0x4ca   : > { %1094 = shalt.err (!%p1091_p5)
}
 0x4cb   : > { %s1210_s1 = smov [#allocation11]  }
 0x4cc   : > { %836 = dma.smem_to_hbm (%p853_p13), %s1210_s1, 16, %s1616_s4, [#allocation5]  }
 0x4cd   : > { %1156 = dma.done.wait (%p853_p13), [#allocation5], 16  }
 0x4ce   : > { %1158 = vsyncadd (%p853_p13), [#allocation5], 4294967280 }
 0x4cf   : > { %644 = sfence }
 0x4d0 PF: > { %s1652_s26 = sld [smem:[#allocation17_spill]]  ;;  %s1653_s12 = sld [smem:[#allocation18_spill]] }
 0x4d1   : > { %s1654_s10 = sld [smem:[#allocation19_spill]]  ;;  %s1655_s15 = smov %s1165_s16 }
 0x4d2   : > { %s1656_s16 = smov %s1169_s17  ;;  %s1657_s17 = smov %s1425_s25 }
 0x4d3   : > { %s1658_s18 = smov %s1177_s19  ;;  %s1659_s19 = smov %s1181_s20 }
 0x4d4   : > { %s1660_s20 = smov %s1466_s9  ;;  %s1661_s21 = smov %s1193_s23 }
 0x4d5   : > { %s1662_s22 = smov %s1197_s24 }
 0x4d6   : > { %s24_s28 = sadd.s32 1, %s1652_s26   ;;  %s1663_s23 = smov %s1653_s12 }
 0x4d7   : > { %p21_p4 = scmp.ge.s32.totalorder %s24_s28, 6   ;;  %s1664_s24 = smov %s1654_s10 }
 0x4d8   : > { %s1665_s25 = smov %s24_s28 }
 0x4d9   :  { %23 = sbr.rel (!%p21_p4) target bundleno = 16 (0x10), region = 129 }
 0x4e0   :  { %650 = vsyncpa [#allocation4], 1 }
 0x4e1   :  { %652 = vsyncpa [#allocation4 + $0x1], 1 }
 0x4e2   :  { %653 = vsyncpa [#allocation7], 1 }
 0x4e3   :  { %655 = vsyncpa [#allocation7 + $0x1], 1 }
 0x4e4   :  { %656 = vsyncpa [#allocation10], 1 }
 0x4e5   :  { %658 = vsyncpa [#allocation10 + $0x1], 1 }
 0x4e6   :  { %659 = vsyncpa [#allocation5], 1 }
 0x4e7   :  { %661 = vsyncpa [#allocation5 + $0x1], 1 }

</bundles_post_ra>
